<compile_context>
chip_gen: v5e
topology: v5e:2x2
jax: 0.10.0
libtpu: 0.0.40
codegen_flags: <defaults>
</compile_context>

<pallas_src>
import jax
import jax.numpy as jnp
from jax.experimental import pallas as pl
from jax.experimental.pallas import tpu as pltpu


# ----------------------------------------------------------------------------
# helpers
# ----------------------------------------------------------------------------
def _pick_tile(total, max_tile, align):
    """Largest tile that divides `total`, is <= max_tile and align-multiple
    (or falls back to the whole extent, which is always layout-legal)."""
    if total <= max_tile:
        return total
    t = (min(max_tile, total) // align) * align
    while t >= align:
        if total % t == 0:
            return t
        t -= align
    return total  # single block fallback


# ----------------------------------------------------------------------------
# Pallas kernel 1: fused Conv1d(k=3, pad=1) + ReLU + masked mean-pool
# ----------------------------------------------------------------------------
def _conv_pool_kernel(x_ref, m_ref, w_ref, b_ref, out_ref):
    # x_ref:   (TB, L, C) f32  BiLSTM hidden states for TB batch rows
    # m_ref:   (TB, L, 1) f32  (pos < len) / len  mask, precomputed in wrapper
    # w_ref:   (3, C, C)  bf16 per-tap conv weights; tap t contracts x[l + t - 1]
    # b_ref:   (1, C)     f32  bias
    # out_ref: (TB, C)    f32  pooled outputs (sublane/lane dense)
    TB, L, C = x_ref.shape
    TBL = TB * L
    xf = x_ref[...].reshape(TBL, C)                       # flat (TB*L, C) slab

    # Within-sequence position of every row of the flat slab.
    pos = jax.lax.broadcasted_iota(jnp.int32, (TB, L, 1), 1).reshape(TBL, 1)
    keep_prev = (pos >= 1).astype(jnp.float32)            # zero row 0 of each seq
    keep_next = (pos <= L - 2).astype(jnp.float32)        # zero row L-1 of each seq

    # Conv taps as sublane rolls on the XLU (co-issue with the MXU matmuls).
    # Rows that wrap across a sequence/batch boundary are exactly the rows the
    # boundary mask zeroes (the conv's zero padding), so the wrap is harmless.
    x_prev = pltpu.roll(xf, 1, axis=0) * keep_prev        # row l -> x[l-1]
    x_next = pltpu.roll(xf, TBL - 1, axis=0) * keep_next  # row l -> x[l+1]

    # Implicit-GEMM conv: three accumulating bf16 MXU matmuls, f32 accumulation.
    acc = jnp.dot(x_prev.astype(jnp.bfloat16), w_ref[0],
                  preferred_element_type=jnp.float32)
    acc = acc + jnp.dot(xf.astype(jnp.bfloat16), w_ref[1],
                        preferred_element_type=jnp.float32)
    acc = acc + jnp.dot(x_next.astype(jnp.bfloat16), w_ref[2],
                        preferred_element_type=jnp.float32)
    y = jnp.maximum(acc + b_ref[...], 0.0).reshape(TB, L, C)

    # Fused masked mean-pool (mask already carries the 1/len factor).
    out_ref[...] = jnp.sum(y * m_ref[...], axis=1)        # (TB, C)


def conv_relu_pool(x, lens, w_taps_bf16, bias):
    """Fused Conv1d(k=3, pad=1) + ReLU + masked mean-pool.  x: (B, L, C) f32."""
    B, L, C = x.shape
    lens = lens.astype(jnp.int32)
    mask = (jnp.arange(L, dtype=jnp.int32)[None, :] < lens[:, None]).astype(jnp.float32)
    inv_len = 1.0 / jnp.maximum(lens, 1).astype(jnp.float32)
    mask_scale = (mask * inv_len[:, None])[:, :, None]    # (B, L, 1)

    # Batch several rows per grid step (amortizes ~0.35 us/step overhead and
    # keeps the output block dense) while staying inside the scoped-VMEM
    # defaults of every TPU generation (v7x has the smallest budget).
    row_budget = max(8, (6 << 20) // max(L * C * 4 * 6, 1))
    tb = _pick_tile(B, row_budget, 8)

    return pl.pallas_call(
        _conv_pool_kernel,
        out_shape=jax.ShapeDtypeStruct((B, C), jnp.float32),
        grid=(B // tb,),
        in_specs=[
            pl.BlockSpec((tb, L, C), lambda i: (i, 0, 0)),
            pl.BlockSpec((tb, L, 1), lambda i: (i, 0, 0)),
            pl.BlockSpec((3, C, C), lambda i: (0, 0, 0)),   # resident bf16 weights
            pl.BlockSpec((1, C), lambda i: (0, 0)),
        ],
        out_specs=pl.BlockSpec((tb, C), lambda i: (i, 0)),
        compiler_params=pltpu.CompilerParams(
            dimension_semantics=("parallel",),
            vmem_limit_bytes=32 << 20),
    )(x, mask_scale, w_taps_bf16, bias)


# ----------------------------------------------------------------------------
# Pallas kernel 2: matching head
#   sim[q, c] = -sum_{j in shots of c} ||s_{c,j} - q||^2
#             =  2 * q . S_c - sum_j ||s_{c,j}||^2   (+ const per row, dropped)
# Support-side terms S_c and sum_j||s_{c,j}||^2 are precomputed once in the
# wrapper; padded classes carry a huge norm so they vanish in log_softmax.
# ----------------------------------------------------------------------------
def _match_kernel(ssum_ref, ssq_ref, que_ref, out_ref):
    # ssum_ref: (NPAD, d) bf16  per-class summed supports (zero for pad classes)
    # ssq_ref:  (1, NPAD) f32   per-class summed squared norms (1e30 for pads)
    # que_ref:  (TQ, d)   bf16  query-embedding tile
    # out_ref:  (TQ, NPAD) f32  log_softmax over classes (pad cols ~ -1e30)
    cross = jax.lax.dot_general(
        que_ref[...], ssum_ref[...], (((1,), (1,)), ((), ())),
        preferred_element_type=jnp.float32)                # (TQ, NPAD)
    sim = 2.0 * cross - ssq_ref[...]                       # pad cols ~ -1e30
    m = jnp.max(sim, axis=1, keepdims=True)
    z = sim - m
    lse = jnp.log(jnp.sum(jnp.exp(z), axis=1, keepdims=True))
    out_ref[...] = z - lse


def match_log_softmax(support_emb, query_emb, n, k, tq_max=256):
    nk, d = support_emb.shape
    qk = query_emb.shape[0]
    assert nk == n * k

    # Support-side reductions hoisted out of the per-query-tile loop.
    s_sum = support_emb.reshape(n, k, d).sum(axis=1)                      # (n, d)
    sup_sq_c = jnp.sum(support_emb * support_emb, axis=1).reshape(n, k).sum(axis=1)

    npad = max(128, ((n + 127) // 128) * 128)              # lane-dense class dim
    s_sum_p = jnp.zeros((npad, d), jnp.bfloat16).at[:n, :].set(
        s_sum.astype(jnp.bfloat16))
    ssq_p = jnp.full((1, npad), 1e30, jnp.float32).at[0, :n].set(sup_sq_c)
    que = query_emb.astype(jnp.bfloat16)

    tq = _pick_tile(qk, tq_max, 8)
    out = pl.pallas_call(
        _match_kernel,
        out_shape=jax.ShapeDtypeStruct((qk, npad), jnp.float32),
        grid=(qk // tq,),
        in_specs=[
            pl.BlockSpec((npad, d), lambda i: (0, 0)),     # resident support sums
            pl.BlockSpec((1, npad), lambda i: (0, 0)),
            pl.BlockSpec((tq, d), lambda i: (i, 0)),
        ],
        out_specs=pl.BlockSpec((tq, npad), lambda i: (i, 0)),
        compiler_params=pltpu.CompilerParams(
            dimension_semantics=("parallel",),
            vmem_limit_bytes=32 << 20),
    )(s_sum_p, ssq_p, que)
    return out[:, :n]


# ----------------------------------------------------------------------------
# Plain-JAX glue: embedding and merged-direction BiLSTM encoder
# ----------------------------------------------------------------------------
def _bilstm(x, params):
    # Input projection hoisted out of the recurrence (one big MXU GEMM per
    # direction), emitted directly in (L, 2, B, 4H) layout; both directions
    # share a single lax.scan over time.
    B, L, E = x.shape
    H = params["w_hh_f"].shape[1]

    xt = jnp.swapaxes(x, 0, 1)                                   # (L, B, E)
    pf = xt @ params["w_ih_f"].T + params["b_f"]                 # (L, B, 4H)
    pb = xt[::-1] @ params["w_ih_b"].T + params["b_b"]           # reversed time
    proj = jnp.stack([pf, pb], axis=1)                           # (L, 2, B, 4H)
    w_hh = jnp.stack([params["w_hh_f"], params["w_hh_b"]], axis=0)  # (2, 4H, H)

    def step(carry, pt):                                         # pt: (2, B, 4H)
        h, c = carry                                             # (2, B, H)
        gates = pt + jnp.einsum("dbh,dgh->dbg", h, w_hh)
        i, f, g, o = jnp.split(gates, 4, axis=-1)                # PyTorch order i,f,g,o
        i = jax.nn.sigmoid(i)
        f = jax.nn.sigmoid(f)
        g = jnp.tanh(g)
        o = jax.nn.sigmoid(o)
        c = f * c + i * g
        h = o * jnp.tanh(c)
        return (h, c), h

    init = (jnp.zeros((2, B, H), x.dtype), jnp.zeros((2, B, H), x.dtype))
    _, hs = jax.lax.scan(step, init, proj)                       # (L, 2, B, H)
    hf = jnp.swapaxes(hs[:, 0], 0, 1)                            # (B, L, H)
    hb = jnp.swapaxes(hs[::-1, 1], 0, 1)                         # un-reversed bwd dir
    return jnp.concatenate([hf, hb], axis=-1)                    # (B, L, 2H)


def _embed(tokens, lens, params, w_conv_bf16):
    # EmbedDrop (dropout) is identity at inference.
    x = params["embed"][tokens]                                  # (B, L, E)
    h = _bilstm(x, params)                                       # (B, L, 2H)
    # TODO(synk): PyTorch's BiLstmEncoder uses packed sequences; here the full
    # padded sequence is encoded and lens only gate the fused decoder pooling.
    return conv_relu_pool(h, lens, w_conv_bf16, params["b_conv"])  # (B, 2H)


def nn_net_forward(support_tok, query_tok, sup_len, que_len, params):
    n, k, sup_seq = support_tok.shape
    qk, _ = query_tok.shape
    # Cast grid-invariant conv weights to bf16 once, outside the kernels.
    w_conv_bf16 = params["w_conv"].astype(jnp.bfloat16)
    support = support_tok.reshape(n * k, sup_seq)
    sup_emb = _embed(support, sup_len, params, w_conv_bf16)      # (n*k, dim)
    que_emb = _embed(query_tok, que_len, params, w_conv_bf16)    # (qk, dim)
    assert sup_emb.shape[1] == que_emb.shape[1]
    return match_log_softmax(sup_emb, que_emb, n, k)             # (qk, n)


# ----------------------------------------------------------------------------
# Pure-JAX reference (same BiLSTM, explicit conv / distance) for verification
# ----------------------------------------------------------------------------
def _conv_pool_ref(h, lens, w_taps, bias):
    B, L, C = h.shape
    hp = jnp.pad(h, ((0, 0), (1, 1), (0, 0)))
    y = (hp[:, 0:L] @ w_taps[0] + hp[:, 1:L + 1] @ w_taps[1]
         + hp[:, 2:L + 2] @ w_taps[2] + bias)
    y = jnp.maximum(y, 0.0)
    lens = lens.astype(jnp.int32)
    mask = (jnp.arange(L)[None, :] < lens[:, None]).astype(jnp.float32)
    pooled = (y * mask[:, :, None]).sum(axis=1)
    return pooled / jnp.maximum(lens, 1).astype(jnp.float32)[:, None]


def nn_net_forward_ref(support_tok, query_tok, sup_len, que_len, params):
    n, k, sup_seq = support_tok.shape
    qk = query_tok.shape[0]
    support = support_tok.reshape(n * k, sup_seq)

    def embed_ref(tok, lens):
        h = _bilstm(params["embed"][tok], params)
        return _conv_pool_ref(h, lens, params["w_conv"], params["b_conv"])

    sup_emb = embed_ref(support, sup_len)
    que_emb = embed_ref(query_tok, que_len)
    diff = sup_emb[None, :, :] - que_emb[:, None, :]             # (qk, nk, d)
    sim = -(diff ** 2).reshape(qk, n, k, -1).sum(axis=(-1, -2))  # (qk, n)
    return jax.nn.log_softmax(sim, axis=1)


# ----------------------------------------------------------------------------
# Demo
# ----------------------------------------------------------------------------
if __name__ == "__main__":
    key = jax.random.PRNGKey(0)
    n, k, qk = 2, 2, 4
    seq = 8
    vocab, embed_size = 32, 16
    hidden = 16
    bidirectional = True
    C = (1 + int(bidirectional)) * hidden   # decoder channel dim = 32

    ks = jax.random.split(key, 12)
    s = 0.1
    params = {
        "embed": s * jax.random.normal(ks[0], (vocab, embed_size), jnp.float32),
        "w_ih_f": s * jax.random.normal(ks[1], (4 * hidden, embed_size), jnp.float32),
        "w_hh_f": s * jax.random.normal(ks[2], (4 * hidden, hidden), jnp.float32),
        "b_f": s * jax.random.normal(ks[3], (4 * hidden,), jnp.float32),
        "w_ih_b": s * jax.random.normal(ks[4], (4 * hidden, embed_size), jnp.float32),
        "w_hh_b": s * jax.random.normal(ks[5], (4 * hidden, hidden), jnp.float32),
        "b_b": s * jax.random.normal(ks[6], (4 * hidden,), jnp.float32),
        # per-tap conv weights: w_conv[t] == torch_conv.weight[:, :, t].T  (C_in, C_out)
        "w_conv": s * jax.random.normal(ks[7], (3, C, C), jnp.float32),
        "b_conv": s * jax.random.normal(ks[8], (1, C), jnp.float32),
    }

    support_tok = jax.random.randint(ks[9], (n, k, seq), 0, vocab)
    query_tok = jax.random.randint(ks[10], (qk, seq), 0, vocab)
    sup_len = jnp.array([8, 6, 8, 5], dtype=jnp.int32)
    que_len = jnp.array([7, 8, 4, 8], dtype=jnp.int32)

    fwd = jax.jit(nn_net_forward)
    out = jax.block_until_ready(fwd(support_tok, query_tok, sup_len, que_len, params))
    assert out.shape == (qk, n)
    # rows of log_softmax must exponentiate-sum to 1
    assert bool(jnp.allclose(jnp.exp(out).sum(axis=1), 1.0, atol=1e-4))

    # verify against the pure-JAX reference (bf16 matmul operands -> loose tol)
    ref = jax.jit(nn_net_forward_ref)(support_tok, query_tok, sup_len, que_len, params)
    assert bool(jnp.allclose(out, ref, atol=2e-2)), (out, ref)
    print("KERNEL_OK")
</pallas_src>

<mosaic_0001>
module attributes {stable_mosaic.version = 11 : i64} {
  func.func @_conv_pool_kernel(%arg0: i32, %arg1: memref<4x8x32xf32, #tpu.memory_space<vmem>>, %arg2: memref<4x8x1xf32, #tpu.memory_space<vmem>>, %arg3: memref<3x32x32xbf16, #tpu.memory_space<vmem>>, %arg4: memref<1x32xf32, #tpu.memory_space<vmem>>, %arg5: memref<4x32xf32, #tpu.memory_space<vmem>>) attributes {dimension_semantics = [#tpu.dimension_semantics<parallel>], iteration_bounds = array<i64: 1>, scalar_prefetch = 0 : i64, scratch_operands = 0 : i64, tpu.core_type = #tpu.core_type<tc>, window_params = [{transform_indices = @transform_0, window_bounds = array<i64: 4, 8, 32>}, {transform_indices = @transform_1, window_bounds = array<i64: 4, 8, 1>}, {pipeline_mode = #tpu.pipeline_mode<synchronous>, transform_indices = @transform_2, window_bounds = array<i64: 3, 32, 32>}, {pipeline_mode = #tpu.pipeline_mode<synchronous>, transform_indices = @transform_3, window_bounds = array<i64: 1, 32>}, {transform_indices = @transform_4, window_bounds = array<i64: 4, 32>}]} {
    %c0 = arith.constant 0 : index
    %c0_0 = arith.constant 0 : index
    %c0_1 = arith.constant 0 : index
    %0 = vector.load %arg1[%c0, %c0_0, %c0_1] : memref<4x8x32xf32, #tpu.memory_space<vmem>>, vector<4x8x32xf32>
    %1 = vector.shape_cast %0 : vector<4x8x32xf32> to vector<32x32xf32>
    %2 = tpu.iota {dimensions = array<i32: 1>} : vector<4x8x1xi32>
    %3 = vector.shape_cast %2 : vector<4x8x1xi32> to vector<32x1xi32>
    %c1_i32 = arith.constant 1 : i32
    %4 = vector.broadcast %c1_i32 : i32 to vector<32x1xi32>
    %5 = arith.cmpi sge, %3, %4 : vector<32x1xi32>
    %6 = arith.extui %5 : vector<32x1xi1> to vector<32x1xi32>
    %7 = arith.sitofp %6 : vector<32x1xi32> to vector<32x1xf32>
    %c6_i32 = arith.constant 6 : i32
    %8 = vector.broadcast %c6_i32 : i32 to vector<32x1xi32>
    %9 = arith.cmpi sle, %3, %8 : vector<32x1xi32>
    %10 = arith.extui %9 : vector<32x1xi1> to vector<32x1xi32>
    %11 = arith.sitofp %10 : vector<32x1xi32> to vector<32x1xf32>
    %c1_i32_2 = arith.constant 1 : i32
    %12 = tpu.dynamic_rotate %1 by %c1_i32_2 dim 0 : vector<32x32xf32>, i32 -> vector<32x32xf32>
    %13 = vector.broadcast %7 : vector<32x1xf32> to vector<32x32xf32>
    %14 = arith.mulf %12, %13 : vector<32x32xf32>
    %c31_i32 = arith.constant 31 : i32
    %15 = tpu.dynamic_rotate %1 by %c31_i32 dim 0 : vector<32x32xf32>, i32 -> vector<32x32xf32>
    %16 = vector.broadcast %11 : vector<32x1xf32> to vector<32x32xf32>
    %17 = arith.mulf %15, %16 : vector<32x32xf32>
    %18 = arith.truncf %14 : vector<32x32xf32> to vector<32x32xbf16>
    %c0_3 = arith.constant 0 : index
    %c0_4 = arith.constant 0 : index
    %c0_5 = arith.constant 0 : index
    %19 = vector.load %arg3[%c0_3, %c0_4, %c0_5] : memref<3x32x32xbf16, #tpu.memory_space<vmem>>, vector<1x32x32xbf16>
    %20 = vector.shape_cast %19 : vector<1x32x32xbf16> to vector<32x32xbf16>
    %cst = arith.constant dense<0.000000e+00> : vector<32x32xf32>
    %21 = tpu.matmul %18, %20, %cst {dimension_numbers = #tpu.dot_dimension_numbers<[1], [0], [0], [1], [0, 0, 1, 1], [], []>} : vector<32x32xbf16>, vector<32x32xbf16>, vector<32x32xf32> -> vector<32x32xf32>
    %22 = arith.truncf %1 : vector<32x32xf32> to vector<32x32xbf16>
    %c1 = arith.constant 1 : index
    %c0_6 = arith.constant 0 : index
    %c0_7 = arith.constant 0 : index
    %23 = vector.load %arg3[%c1, %c0_6, %c0_7] : memref<3x32x32xbf16, #tpu.memory_space<vmem>>, vector<1x32x32xbf16>
    %24 = vector.shape_cast %23 : vector<1x32x32xbf16> to vector<32x32xbf16>
    %cst_8 = arith.constant dense<0.000000e+00> : vector<32x32xf32>
    %25 = tpu.matmul %22, %24, %cst_8 {dimension_numbers = #tpu.dot_dimension_numbers<[1], [0], [0], [1], [0, 0, 1, 1], [], []>} : vector<32x32xbf16>, vector<32x32xbf16>, vector<32x32xf32> -> vector<32x32xf32>
    %26 = arith.addf %21, %25 : vector<32x32xf32>
    %27 = arith.truncf %17 : vector<32x32xf32> to vector<32x32xbf16>
    %c2 = arith.constant 2 : index
    %c0_9 = arith.constant 0 : index
    %c0_10 = arith.constant 0 : index
    %28 = vector.load %arg3[%c2, %c0_9, %c0_10] : memref<3x32x32xbf16, #tpu.memory_space<vmem>>, vector<1x32x32xbf16>
    %29 = vector.shape_cast %28 : vector<1x32x32xbf16> to vector<32x32xbf16>
    %cst_11 = arith.constant dense<0.000000e+00> : vector<32x32xf32>
    %30 = tpu.matmul %27, %29, %cst_11 {dimension_numbers = #tpu.dot_dimension_numbers<[1], [0], [0], [1], [0, 0, 1, 1], [], []>} : vector<32x32xbf16>, vector<32x32xbf16>, vector<32x32xf32> -> vector<32x32xf32>
    %31 = arith.addf %26, %30 : vector<32x32xf32>
    %c0_12 = arith.constant 0 : index
    %c0_13 = arith.constant 0 : index
    %32 = vector.load %arg4[%c0_12, %c0_13] : memref<1x32xf32, #tpu.memory_space<vmem>>, vector<1x32xf32>
    %33 = vector.broadcast %32 : vector<1x32xf32> to vector<32x32xf32>
    %34 = arith.addf %31, %33 : vector<32x32xf32>
    %cst_14 = arith.constant 0.000000e+00 : f32
    %35 = vector.broadcast %cst_14 : f32 to vector<32x32xf32>
    %36 = arith.maximumf %34, %35 : vector<32x32xf32>
    %37 = vector.shape_cast %36 : vector<32x32xf32> to vector<4x8x32xf32>
    %c0_15 = arith.constant 0 : index
    %c0_16 = arith.constant 0 : index
    %c0_17 = arith.constant 0 : index
    %38 = vector.load %arg2[%c0_15, %c0_16, %c0_17] : memref<4x8x1xf32, #tpu.memory_space<vmem>>, vector<4x8x1xf32>
    %39 = vector.broadcast %38 : vector<4x8x1xf32> to vector<4x8x32xf32>
    %40 = arith.mulf %37, %39 : vector<4x8x32xf32>
    %cst_18 = arith.constant dense<0.000000e+00> : vector<4x32xf32>
    %41 = vector.multi_reduction <add>, %40, %cst_18 [1] : vector<4x8x32xf32> to vector<4x32xf32>
    %c0_19 = arith.constant 0 : index
    %c0_20 = arith.constant 0 : index
    %42 = vector.load %arg5[%c0_19, %c0_20] : memref<4x32xf32, #tpu.memory_space<vmem>>, vector<4x32xf32>
    tpu.vector_store %arg5[%c0_19, %c0_20], %41 {strides = array<i32>} : memref<4x32xf32, #tpu.memory_space<vmem>>, vector<4x32xf32>,
    return
  }
  func.func @transform_0(%arg0: i32) -> (i32, i32, i32) {
    %c0_i32 = arith.constant 0 : i32
    %c0_i32_0 = arith.constant 0 : i32
    %c0_i32_1 = arith.constant 0 : i32
    return %arg0, %c0_i32, %c0_i32_0 : i32, i32, i32
  }
  func.func @transform_1(%arg0: i32) -> (i32, i32, i32) {
    %c0_i32 = arith.constant 0 : i32
    %c0_i32_0 = arith.constant 0 : i32
    %c0_i32_1 = arith.constant 0 : i32
    return %arg0, %c0_i32, %c0_i32_0 : i32, i32, i32
  }
  func.func @transform_2(%arg0: i32) -> (i32, i32, i32) {
    %c0_i32 = arith.constant 0 : i32
    %c0_i32_0 = arith.constant 0 : i32
    %c0_i32_1 = arith.constant 0 : i32
    %c0_i32_2 = arith.constant 0 : i32
    return %c0_i32, %c0_i32_0, %c0_i32_1 : i32, i32, i32
  }
  func.func @transform_3(%arg0: i32) -> (i32, i32) {
    %c0_i32 = arith.constant 0 : i32
    %c0_i32_0 = arith.constant 0 : i32
    %c0_i32_1 = arith.constant 0 : i32
    return %c0_i32, %c0_i32_0 : i32, i32
  }
  func.func @transform_4(%arg0: i32) -> (i32, i32) {
    %c0_i32 = arith.constant 0 : i32
    %c0_i32_0 = arith.constant 0 : i32
    return %arg0, %c0_i32 : i32, i32
  }
}

module attributes {stable_mosaic.version = 11 : i64} {
  func.func @_match_kernel(%arg0: i32, %arg1: memref<128x32xbf16, #tpu.memory_space<vmem>>, %arg2: memref<1x128xf32, #tpu.memory_space<vmem>>, %arg3: memref<4x32xbf16, #tpu.memory_space<vmem>>, %arg4: memref<4x128xf32, #tpu.memory_space<vmem>>) attributes {dimension_semantics = [#tpu.dimension_semantics<parallel>], iteration_bounds = array<i64: 1>, scalar_prefetch = 0 : i64, scratch_operands = 0 : i64, tpu.core_type = #tpu.core_type<tc>, window_params = [{pipeline_mode = #tpu.pipeline_mode<synchronous>, transform_indices = @transform_0, window_bounds = array<i64: 128, 32>}, {pipeline_mode = #tpu.pipeline_mode<synchronous>, transform_indices = @transform_1, window_bounds = array<i64: 1, 128>}, {transform_indices = @transform_2, window_bounds = array<i64: 4, 32>}, {transform_indices = @transform_3, window_bounds = array<i64: 4, 128>}]} {
    %c0 = arith.constant 0 : index
    %c0_0 = arith.constant 0 : index
    %0 = vector.load %arg3[%c0, %c0_0] : memref<4x32xbf16, #tpu.memory_space<vmem>>, vector<4x32xbf16>
    %c0_1 = arith.constant 0 : index
    %c0_2 = arith.constant 0 : index
    %1 = vector.load %arg1[%c0_1, %c0_2] : memref<128x32xbf16, #tpu.memory_space<vmem>>, vector<128x32xbf16>
    %cst = arith.constant dense<0.000000e+00> : vector<4x128xf32>
    %2 = tpu.matmul %0, %1, %cst {dimension_numbers = #tpu.dot_dimension_numbers<[1], [1], [0], [0], [0, 0, 1, 0], [], []>} : vector<4x32xbf16>, vector<128x32xbf16>, vector<4x128xf32> -> vector<4x128xf32>
    %cst_3 = arith.constant 2.000000e+00 : f32
    %3 = vector.broadcast %cst_3 : f32 to vector<4x128xf32>
    %4 = arith.mulf %3, %2 : vector<4x128xf32>
    %c0_4 = arith.constant 0 : index
    %c0_5 = arith.constant 0 : index
    %5 = vector.load %arg2[%c0_4, %c0_5] : memref<1x128xf32, #tpu.memory_space<vmem>>, vector<1x128xf32>
    %6 = vector.broadcast %5 : vector<1x128xf32> to vector<4x128xf32>
    %7 = arith.subf %4, %6 : vector<4x128xf32>
    %cst_6 = arith.constant dense<0xFF800000> : vector<4xf32>
    %8 = vector.multi_reduction <maximumf>, %7, %cst_6 [1] : vector<4x128xf32> to vector<4xf32>
    %9 = vector.shape_cast %8 : vector<4xf32> to vector<4x1xf32>
    %10 = vector.broadcast %9 : vector<4x1xf32> to vector<4x128xf32>
    %11 = arith.subf %7, %10 : vector<4x128xf32>
    %12 = math.exp %11 : vector<4x128xf32>
    %cst_7 = arith.constant dense<0.000000e+00> : vector<4xf32>
    %13 = vector.multi_reduction <add>, %12, %cst_7 [1] : vector<4x128xf32> to vector<4xf32>
    %14 = vector.shape_cast %13 : vector<4xf32> to vector<4x1xf32>
    %15 = math.log %14 : vector<4x1xf32>
    %16 = vector.broadcast %15 : vector<4x1xf32> to vector<4x128xf32>
    %17 = arith.subf %11, %16 : vector<4x128xf32>
    %c0_8 = arith.constant 0 : index
    %c0_9 = arith.constant 0 : index
    %18 = vector.load %arg4[%c0_8, %c0_9] : memref<4x128xf32, #tpu.memory_space<vmem>>, vector<4x128xf32>
    tpu.vector_store %arg4[%c0_8, %c0_9], %17 {strides = array<i32>} : memref<4x128xf32, #tpu.memory_space<vmem>>, vector<4x128xf32>,
    return
  }
  func.func @transform_0(%arg0: i32) -> (i32, i32) {
    %c0_i32 = arith.constant 0 : i32
    %c0_i32_0 = arith.constant 0 : i32
    %c0_i32_1 = arith.constant 0 : i32
    return %c0_i32, %c0_i32_0 : i32, i32
  }
  func.func @transform_1(%arg0: i32) -> (i32, i32) {
    %c0_i32 = arith.constant 0 : i32
    %c0_i32_0 = arith.constant 0 : i32
    %c0_i32_1 = arith.constant 0 : i32
    return %c0_i32, %c0_i32_0 : i32, i32
  }
  func.func @transform_2(%arg0: i32) -> (i32, i32) {
    %c0_i32 = arith.constant 0 : i32
    %c0_i32_0 = arith.constant 0 : i32
    return %arg0, %c0_i32 : i32, i32
  }
  func.func @transform_3(%arg0: i32) -> (i32, i32) {
    %c0_i32 = arith.constant 0 : i32
    %c0_i32_0 = arith.constant 0 : i32
    return %arg0, %c0_i32 : i32, i32
  }
}

</mosaic_0001>

<bundles_post_ra>
// kernel: custom-call
= control target key start
LH: loop header
LB: loop body
LE: loop exit
PB: predicated region body
PF: predicated region fallthrough
CT: control target
= control target key end

     0   :  { %s6_s0 = inlined_call_operand.vmem [shape: f32[2,4,16], index: 0, kind: output, shape index: {}]  }

// kernel: nn_net_forward.5
= control target key start
LH: loop header
LB: loop body
LE: loop exit
PB: predicated region body
PF: predicated region fallthrough
CT: control target
= control target key end

     0   :  { %vm71_vm0 = vcmask 261120   ;;  %vm118_vm1 = vcmask 1043456   ;;  %s244_s0 = inlined_call_operand.vmem [shape: bf16[128,32], index: 0, kind: input, shape index: {}]   ;;  %s245_s2 = inlined_call_operand.vmem [shape: bf16[4,32], index: 2, kind: input, shape index: {}]   ;;  %s246_s1 = inlined_call_operand.vmem [shape: f32[1,128], index: 1, kind: input, shape index: {}]   ;;  %s247_s3 = inlined_call_operand.vmem [shape: f32[4,128], index: 3, kind: output, shape index: {}]  }
   0x1   :  { %v176_v0 = vld [vmem:[%s244_s0 + $0x38] sm:$0xff]  ;;  %v175_v2 = vld [vmem:[%s244_s0 + $0x30] sm:$0xff]  ;;  %v174_v4 = vld [vmem:[%s244_s0 + $0x28] sm:$0xff] }
   0x2   :  { %v97_v1 = vsel %vm71_vm0, %v176_v0, 0  ;;  %v94_v3 = vsel %vm71_vm0, %v175_v2, 0  ;;  %v91_v5 = vsel %vm71_vm0, %v174_v4, 0  ;;  %v173_v6 = vld [vmem:[%s244_s0 + $0x20] sm:$0xff]  ;;  %v172_v8 = vld [vmem:[%s244_s0 + $0x18] sm:$0xff]  ;;  %v171_v10 = vld [vmem:[%s244_s0 + $0x10] sm:$0xff] }
   0x3   :  { %99 = vmatpush.bf16.xpose.msra.mxu0 %v97_v1  ;;  %v88_v7 = vsel %vm71_vm0, %v173_v6, 0  ;;  %v85_v9 = vsel %vm71_vm0, %v172_v8, 0  ;;  %v82_v11 = vsel %vm71_vm0, %v171_v10, 0  ;;  %v170_v12 = vld [vmem:[%s244_s0 + $0x8] sm:$0xff]  ;;  %v169_v14 = vld [vmem:[%s244_s0] sm:$0xff] }
   0x4   :  { %v79_v13 = vsel %vm71_vm0, %v170_v12, 0  ;;  %v76_v15 = vsel %vm71_vm0, %v169_v14, 0  ;;  %v14_v16 = vld [vmem:[%s245_s2] sm:$0x3] }
   0x5   :  { %v177_v17 = vld [vmem:[%s246_s1] ss:$0 sm:$0xff] }
   0xb   :  { %100 = vmatpush.bf16.xpose.msra.mxu0 %v94_v3 }
  0x13   :  { %101 = vmatpush.bf16.xpose.msra.mxu0 %v91_v5 }
  0x1b   :  { %102 = vmatpush.bf16.xpose.msra.mxu0 %v88_v7 }
  0x23   :  { %103 = vmatpush.bf16.xpose.msra.mxu0 %v85_v9 }
  0x2b   :  { %104 = vmatpush.bf16.xpose.msra.mxu0 %v82_v11 }
  0x33   :  { %105 = vmatpush.bf16.xpose.msra.mxu0 %v79_v13 }
  0x3b   :  { %106 = vmatpush.bf16.xpose.msra.mxu0 %v76_v15 }
  0x42   :  { %168 = vmatmul.msk.bf16.vlgmr.msra.gmra.mxu0 %vm71_vm0, %v14_v16 }
  0xbf   :  { %v108_v18 = vpop.f32.mrf.mxu0 }
  0xc0   :  { %v112_v19 = vmul.f32 2.0, %v108_v18 }
  0xc2   :  { %v117_v20 = vsub.f32 %v112_v19, %v177_v17 }
  0xc4   :  { %v119_v21 = vsel %vm118_vm1, %v117_v20, -inf }
  0xc5   :  { %120 = vmax.xlane.f32.xlu0 %v119_v21 }
  0xc7   :  { %v110_v22 = vpop.f32.mrf.mxu0 }
 0x138   :  { %v121_v23 = vpop.xlane.xlu0 %120 }
 0x139   :  { %v122_v24 = vsub.f32 %v117_v20, %v121_v23 }
 0x13b   :  { %v123_v25 = vmul.f32 1.442695, %v122_v24 }
 0x13d   :  { %178 = vpow2.f32 %v123_v25 }
 0x143   :  { %v179_v26 = vpop.eup %178 }
 0x144   :  { %v125_v27 = vsel %vm118_vm1, %v179_v26, 0.0 }
 0x145   :  { %126 = vadd.xlane.f32.xlu0 %v125_v27 }
 0x1b8   :  { %v127_v28 = vpop.xlane.xlu0 %126 }
 0x1b9   :  { %180 = vlog2.f32 %v127_v28 }
 0x1bf   :  { %v181_v29 = vpop.eup %180 }
 0x1c0   :  { %v129_v30 = vmul.f32 0.6931472, %v181_v29 }
 0x1c2   :  { %v130_v31 = vsub.f32 %v122_v24, %v129_v30 }
 0x1c4   :  { %131 = vst [vmem:[%s247_s3] sm:$0xf] %v130_v31 }

// kernel: nn_net_forward.3
= control target key start
LH: loop header
LB: loop body
LE: loop exit
PB: predicated region body
PF: predicated region fallthrough
CT: control target
= control target key end

     0   :  { %v22_v0 = vlaneseq  ;;  %v330_v4 = vmov 0   ;;  %vm81_vm0 = vcmask 261120   ;;  %v331_v21 = vmov 0.0   ;;  %s423_s2 = inlined_call_operand.vmem [shape: bf16[3,32,32], index: 2, kind: input, shape index: {}]   ;;  %s424_s0 = inlined_call_operand.vmem [shape: f32[4,8,32], index: 0, kind: input, shape index: {}]   ;;  %s425_s1 = inlined_call_operand.vmem [shape: f32[4,8,1], index: 1, kind: input, shape index: {}]   ;;  %s426_s3 = inlined_call_operand.vmem [shape: f32[1,32], index: 3, kind: input, shape index: {}]   ;;  %s427_s4 = inlined_call_operand.vmem [shape: f32[4,32], index: 4, kind: output, shape index: {}]  }
   0x1   :  { %v320_v1 = vld [vmem:[%s423_s2 + $0x18] sm:$0xff]  ;;  %v318_v2 = vld [vmem:[%s423_s2 + $0x8] sm:$0xff]  ;;  %327 = vset.pattern.permute.xlu0 %v330_v4  ;;  %328 = vset.pattern.permute.xlu1 %v330_v4  ;;  %v319_v5 = vld [vmem:[%s423_s2 + $0x10] sm:$0xff]  ;;  %vm264_vm5 = vcmask 1041409   ;;  %vm266_vm6 = vcmask 1042434   ;;  %vm268_vm7 = vcmask 1043459  }
   0x2   :  { %v322_v3 = vld [vmem:[%s423_s2 + $0x28] sm:$0xff]  ;;  %v317_v6 = vld [vmem:[%s423_s2] sm:$0xff]  ;;  %v23_v8 = vshrl.u32 %v22_v0, 7  ;;  %94 = vmatpush.bf16.msra.mxu0 %v320_v1  ;;  %131 = vmatpush.bf16.msra.mxu1 %v318_v2  ;;  %v21_v11 = vld [vmem:[%s424_s0 + $0x18] sm:$0xff]  ;;  %vm271_vm8 = vcmask 257024  }
   0x3   :  { %v321_v7 = vld [vmem:[%s423_s2 + $0x20] sm:$0xff]  ;;  %v19_v10 = vld [vmem:[%s424_s0 + $0x8] sm:$0xff]  ;;  %175 = vmatpush.bf16.msra.mxu2 %v322_v3  ;;  %323 = vmatpush.bf16.msra.mxu3 %v320_v1  ;;  %v20_v16 = vld [vmem:[%s424_s0 + $0x10] sm:$0xff]  ;;  %v33_v19 = vrot.slane %v21_v11, 7  ;;  %v46_v39 = vrot.slane %v21_v11, 1 }
   0x4   :  { %v18_v9 = vld [vmem:[%s424_s0] sm:$0xff]  ;;  %v31_v13 = vrot.slane %v19_v10, 7  ;;  %v44_v15 = vrot.slane %v19_v10, 1  ;;  %vm24_vm1 = vcmp.ge.s32.totalorder %v23_v8, 1  ;;  %vm34_vm2 = vcmp.lt.s32.totalorder %v23_v8, 1  ;;  %v206_v20 = vld [vmem:[%s425_s1 + $0x10] sm:$0xff] }
   0x5   :  { %v30_v12 = vrot.slane %v18_v9, 7  ;;  %v43_v14 = vrot.slane %v18_v9, 1  ;;  %v204_v17 = vld [vmem:[%s425_s1] sm:$0xff]  ;;  %v62_v18 = vpack.c.bf16 %v19_v10, %v18_v9  ;;  %v277_v22 = vsel %vm24_vm1, 1.0, %v331_v21  ;;  %220 = vperm.xlu1 %328, %v206_v20   ;;  %v205_v35 = vld [vmem:[%s425_s1 + $0x8] sm:$0xff]  ;;  %v207_v37 = vld [vmem:[%s425_s1 + $0x18] sm:$0xff] }
   0x6   :  { %210 = vperm.xlu0 %327, %v204_v17   ;;  %vm27_vm3 = vcmp.le.s32.totalorder %v23_v8, 6  ;;  %v45_v24 = vrot.slane %v20_v16, 1  ;;  %95 = vmatpush.bf16.msra.mxu0 %v319_v5  ;;  %vm47_vm4 = vcmp.lt.s32.totalorder %v23_v8, 7  ;;  %v63_v33 = vpack.c.bf16 %v21_v11, %v20_v16  ;;  %v329_v57 = vld [vmem:[%s426_s3] ss:$0 sm:$0xff] }
   0x7   :  { %v37_v23 = vsel %vm34_vm2, %v30_v12, %v31_v13  ;;  %132 = vmatpush.bf16.msra.mxu1 %v317_v6  ;;  %v38_v25 = vsel %vm34_vm2, %v33_v19, %v30_v12  ;;  %v278_v27 = vsel %vm27_vm3, 1.0, %v331_v21  ;;  %176 = vmatpush.bf16.msra.mxu2 %v321_v7  ;;  %v50_v30 = vsel %vm47_vm4, %v43_v14, %v44_v15 }
   0x8   :  { %v40_v26 = vmul.f32 %v277_v22, %v37_v23  ;;  %v39_v28 = vmul.f32 %v277_v22, %v38_v25  ;;  %v49_v29 = vsel %vm47_vm4, %v44_v15, %v45_v24  ;;  %324 = vmatpush.bf16.msra.mxu3 %v319_v5  ;;  %v52_v31 = vmul.f32 %v278_v27, %v50_v30 }
   0x9   :  { %v53_v32 = vmul.f32 %v278_v27, %v49_v29  ;;  %291 = vmatmul.msk.bf16.vlgmr.msra.gmra.mxu0 %vm81_vm0, %v62_v18  ;;  %v32_v38 = vrot.slane %v20_v16, 7  ;;  %v48_v42 = vsel %vm47_vm4, %v45_v24, %v46_v39  ;;  %v51_v43 = vsel %vm47_vm4, %v46_v39, %v43_v14 }
   0xa   :  { %v56_v34 = vpack.c.bf16 %v40_v26, %v39_v28  ;;  %v54_v46 = vmul.f32 %v278_v27, %v48_v42  ;;  %v55_v47 = vmul.f32 %v278_v27, %v51_v43 }
   0xb   :  { %v144_v36 = vpack.c.bf16 %v53_v32, %v52_v31  ;;  %292 = vmatmul.msk.bf16.vlgmr.msra.gmra.mxu3 %vm81_vm0, %v63_v33  ;;  %v35_v40 = vsel %vm34_vm2, %v32_v38, %v33_v19  ;;  %v36_v41 = vsel %vm34_vm2, %v31_v13, %v32_v38 }
   0xc   :  { %301 = vmatmul.msk.bf16.vlgmr.msra.gmra.mxu1 %vm81_vm0, %v56_v34  ;;  %v41_v44 = vmul.f32 %v277_v22, %v36_v41  ;;  %v42_v45 = vmul.f32 %v277_v22, %v35_v40  ;;  %v145_v49 = vpack.c.bf16 %v55_v47, %v54_v46 }
   0xd   :  { %315 = vmatmul.msk.bf16.vlgmr.msra.gmra.mxu2 %vm81_vm0, %v144_v36  ;;  %225 = vperm.xlu1 %328, %v207_v37  }
   0xe   :  { %215 = vperm.xlu0 %327, %v205_v35   ;;  %v57_v48 = vpack.c.bf16 %v42_v45, %v41_v44 }
  0x1c   :  { %302 = vmatmul.msk.bf16.gmra.mxu1 %vm81_vm0, %v57_v48 }
  0x1d   :  { %316 = vmatmul.msk.bf16.gmra.mxu2 %vm81_vm0, %v145_v49 }
  0x77   :  { %v221_v13 = vpop.permute.xlu1 %220 }
  0x78   :  { %v211_v55 = vpop.permute.xlu0 %210 }
  0x7f   :  { %v226_v33 = vpop.permute.xlu1 %225 }
  0x80   :  { %v216_v3 = vpop.permute.xlu0 %215 }
  0x86   :  { %v97_v51 = vpop.f32.mrf.mxu0 }
  0x89   :  { %v134_v50 = vpop.f32.mrf.mxu1 }
  0x8a   :  { %v135_v52 = vadd.f32 %v134_v50, %v97_v51 }
  0x8e   :  { %v99_v58 = vpop.f32.mrf.mxu0  ;;  %v102_v2 = vpop.f32.mrf.mxu3 }
  0x90   :  { %v178_v53 = vpop.f32.mrf.mxu2 }
  0x91   :  { %v136_v54 = vpop.f32.mrf.mxu1  ;;  %v188_v56 = vadd.f32 %v178_v53, %v135_v52 }
  0x92   :  { %v137_v60 = vadd.f32 %v136_v54, %v99_v58 }
  0x93   :  { %v196_v59 = vadd.f32 %v329_v57, %v188_v56 }
  0x95   :  { %v200_v0 = vmax.f32 %v196_v59, 0.0 }
  0x96   :  { %v104_v18 = vpop.f32.mrf.mxu3 }
  0x97   :  { %v228_v6 = vmul.f32 %v211_v55, %v200_v0 }
  0x98   :  { %v180_v61 = vpop.f32.mrf.mxu2 }
  0x99   :  { %v189_v62 = vadd.f32 %v180_v61, %v137_v60  ;;  %v139_v63 = vpop.f32.mrf.mxu1  ;;  %v232_v11 = vsel %vm81_vm0, %v228_v6, 0.0 }
  0x9a   :  { %v140_v4 = vadd.f32 %v139_v63, %v102_v2  ;;  %v233_v17 = vrot.slane %v232_v11, 4 }
  0x9b   :  { %v197_v1 = vadd.f32 %v329_v57, %v189_v62 }
  0x9c   :  { %v234_v25 = vadd.f32 %v233_v17, %v232_v11 }
  0x9d   :  { %v201_v5 = vmax.f32 %v197_v1, 0.0 }
  0x9e   :  { %v235_v31 = vrot.slane %v234_v25, 2 }
  0x9f   :  { %v229_v7 = vmul.f32 %v216_v3, %v201_v5 }
  0xa0   :  { %v183_v8 = vpop.f32.mrf.mxu2  ;;  %v236_v38 = vadd.f32 %v235_v31, %v234_v25 }
  0xa1   :  { %v239_v9 = vsel %vm81_vm0, %v229_v7, 0.0  ;;  %v190_v10 = vadd.f32 %v183_v8, %v140_v4  ;;  %v141_v15 = vpop.f32.mrf.mxu1 }
  0xa2   :  { %v240_v14 = vrot.slane %v239_v9, 4  ;;  %v142_v20 = vadd.f32 %v141_v15, %v104_v18  ;;  %v237_v43 = vrot.slane %v236_v38, 1 }
  0xa3   :  { %v198_v12 = vadd.f32 %v329_v57, %v190_v10 }
  0xa4   :  { %v241_v21 = vadd.f32 %v240_v14, %v239_v9  ;;  %v238_v48 = vadd.f32 %v237_v43, %v236_v38 }
  0xa5   :  { %v202_v16 = vmax.f32 %v198_v12, 0.0 }
  0xa6   :  { %v242_v28 = vrot.slane %v241_v21, 2 }
  0xa7   :  { %v230_v19 = vmul.f32 %v221_v13, %v202_v16 }
  0xa8   :  { %v185_v22 = vpop.f32.mrf.mxu2  ;;  %v243_v35 = vadd.f32 %v242_v28, %v241_v21 }
  0xa9   :  { %v246_v23 = vsel %vm81_vm0, %v230_v19, 0.0  ;;  %v191_v24 = vadd.f32 %v185_v22, %v142_v20 }
  0xaa   :  { %v247_v26 = vrot.slane %v246_v23, 4  ;;  %v244_v40 = vrot.slane %v243_v35, 1 }
  0xab   :  { %v199_v27 = vadd.f32 %v329_v57, %v191_v24 }
  0xac   :  { %v248_v29 = vadd.f32 %v247_v26, %v246_v23  ;;  %v245_v45 = vadd.f32 %v244_v40, %v243_v35 }
  0xad   :  { %v203_v30 = vmax.f32 %v199_v27, 0.0 }
  0xae   :  { %v249_v32 = vrot.slane %v248_v29, 2  ;;  %v265_v50 = vsel %vm264_vm5, %v245_v45, %v238_v48 }
  0xaf   :  { %v231_v34 = vmul.f32 %v226_v33, %v203_v30 }
  0xb0   :  { %v250_v36 = vadd.f32 %v249_v32, %v248_v29 }
  0xb1   :  { %v253_v37 = vsel %vm81_vm0, %v231_v34, 0.0 }
  0xb2   :  { %v254_v39 = vrot.slane %v253_v37, 4  ;;  %v251_v42 = vrot.slane %v250_v36, 1 }
  0xb4   :  { %v255_v41 = vadd.f32 %v254_v39, %v253_v37  ;;  %v252_v47 = vadd.f32 %v251_v42, %v250_v36 }
  0xb6   :  { %v256_v44 = vrot.slane %v255_v41, 2  ;;  %v267_v52 = vsel %vm266_vm6, %v252_v47, %v265_v50 }
  0xb8   :  { %v257_v46 = vadd.f32 %v256_v44, %v255_v41 }
  0xba   :  { %v258_v49 = vrot.slane %v257_v46, 1 }
  0xbc   :  { %v259_v51 = vadd.f32 %v258_v49, %v257_v46 }
  0xbe   :  { %v269_v53 = vsel %vm268_vm7, %v259_v51, %v267_v52 }
  0xbf   :  { %272 = vst.msk [vmem:[%s427_s4] sm:$0xf] %vm271_vm8, %v269_v53 }

</bundles_post_ra>
